<compile_context>
chip_gen: v7x
topology: tpu7x:2x2x1
jax: 0.10.0
libtpu: 0.0.40
codegen_flags: <defaults>
</compile_context>

<pallas_src>
import jax
import jax.numpy as jnp
from jax.experimental import pallas as pl
from jax.experimental.pallas import tpu as pltpu

KERNEL_SIZE = 7
PADDING = 3  # padding = 3 if kernel_size == 7 else 1 (module asserts kernel_size in (3, 7))


# ----------------------------- kernel helpers ---------------------------------

def _reduce_stats(x_ref, C, tile_b, tile_l, c_chunk):
    """Mean and max over the channel axis, streamed from the ref in chunks."""
    s = jnp.zeros((tile_b, tile_l), jnp.float32)
    m = jnp.full((tile_b, tile_l), -jnp.inf, jnp.float32)
    c0 = 0
    while c0 < C:  # static (trace-time) chunk loop
        cs = min(c_chunk, C - c0)
        xc = x_ref[:, c0:c0 + cs, :].astype(jnp.float32)  # cast AFTER the native-dtype load
        s = s + jnp.sum(xc, axis=1)
        m = jnp.maximum(m, jnp.max(xc, axis=1))
        c0 += cs
    return s * jnp.float32(1.0 / C), m


def _emit(w_ref, sa_ref, sm_ref, o_ref, tile_b, tile_l):
    """7-tap 'same' conv over the halo'd stat rows held in scratch, then sigmoid."""
    s_a = sa_ref[...]                       # (tile_b, tile_l + 2*PADDING), f32
    s_m = sm_ref[...]
    acc = jnp.zeros((tile_b, tile_l), jnp.float32)
    for k in range(KERNEL_SIZE):            # static taps; weights are SMEM scalars
        acc = acc + w_ref[0, k] * s_a[:, k:k + tile_l] + w_ref[1, k] * s_m[:, k:k + tile_l]
    o_ref[...] = jax.nn.sigmoid(acc)[:, None, :].astype(o_ref.dtype)


def _make_single_tile_kernel(C, tile_b, tile_l, c_chunk):
    """Whole L fits one lane-dense tile: zero halos, reduce, conv, store."""
    def kernel(w_ref, x_ref, o_ref, sa_ref, sm_ref):
        avg, mx = _reduce_stats(x_ref, C, tile_b, tile_l, c_chunk)
        zpad = jnp.zeros((tile_b, PADDING), jnp.float32)
        sa_ref[:, :PADDING] = zpad
        sa_ref[:, PADDING + tile_l:] = zpad
        sa_ref[:, PADDING:PADDING + tile_l] = avg
        sm_ref[:, :PADDING] = zpad
        sm_ref[:, PADDING + tile_l:] = zpad
        sm_ref[:, PADDING:PADDING + tile_l] = mx
        _emit(w_ref, sa_ref, sm_ref, o_ref, tile_b, tile_l)
    return kernel


def _make_multi_tile_kernel(C, tile_b, tile_l, nl, c_chunk):
    """L tiled along the grid; conv halo carried in scratch, output delayed by one step."""
    def kernel(w_ref, x_ref, o_ref, sa_ref, sm_ref):
        j = pl.program_id(1)

        # Stats of the current L tile. The trailing step (j == nl) stands for the
        # zero padding past the end of L, so its stats are forced to zero.
        avg, mx = _reduce_stats(x_ref, C, tile_b, tile_l, c_chunk)
        past_end = j == nl
        avg = jnp.where(past_end, 0.0, avg)
        mx = jnp.where(past_end, 0.0, mx)

        # Emit output for L tile (j-1): its left halo + center already sit in
        # scratch; only the right halo (first PADDING cols of tile j) is missing.
        @pl.when(j > 0)
        def _():
            sa_ref[:, PADDING + tile_l:] = avg[:, :PADDING]
            sm_ref[:, PADDING + tile_l:] = mx[:, :PADDING]
            _emit(w_ref, sa_ref, sm_ref, o_ref, tile_b, tile_l)

        # Carry for the next step: [last PADDING cols of tile j-1 | stats of tile j].
        left_a = jnp.where(j == 0, 0.0, sa_ref[:, tile_l:tile_l + PADDING])
        left_m = jnp.where(j == 0, 0.0, sm_ref[:, tile_l:tile_l + PADDING])
        sa_ref[:, :PADDING] = left_a
        sm_ref[:, :PADDING] = left_m
        sa_ref[:, PADDING:PADDING + tile_l] = avg
        sm_ref[:, PADDING:PADDING + tile_l] = mx

    return kernel


# ------------------------------- wrapper ---------------------------------------

def _pick_tile_l(L):
    if L <= 2048:
        return L  # single lane-dense tile: full L stays in the lane dim
    for cand in (2048, 1024, 512, 256, 128):
        if L % cand == 0:
            return cand
    return L


def _pick_tile_b(B, C, tile_l, itemsize, budget_bytes=8 * 1024 * 1024):
    # TODO(synk): if even tile_b=1 exceeds VMEM (huge C*L), add a C-reduction grid
    # axis with running sum/max accumulators instead of shrinking further.
    tile_b = 1
    for cand in (8, 4, 2, 1):
        if B % cand == 0:
            tile_b = cand
            break
    while tile_b > 1 and 2 * tile_b * C * tile_l * itemsize > budget_bytes:
        tile_b //= 2
    return tile_b


def spatial_attention(x, conv_weight, *, tile_b=None, tile_l=None, c_chunk=8,
                      vmem_limit_bytes=32 * 1024 * 1024):
    """x: (B, C, L) float dtype; conv_weight: (1, 2, K) as in nn.Conv1d(2, 1, K, bias=False)."""
    B, C, L = x.shape
    assert conv_weight.shape == (1, 2, KERNEL_SIZE)
    w2 = conv_weight.reshape(2, KERNEL_SIZE).astype(jnp.float32)

    if tile_l is None:
        tile_l = _pick_tile_l(L)
    assert L % tile_l == 0, "tile_l must divide L"
    nl = L // tile_l

    if tile_b is None:
        tile_b = _pick_tile_b(B, C, tile_l, x.dtype.itemsize)
    assert B % tile_b == 0, "tile_b must divide B"
    nb = B // tile_b

    out_shape = jax.ShapeDtypeStruct((B, 1, L), x.dtype)
    scratch_shapes = [
        pltpu.VMEM((tile_b, tile_l + 2 * PADDING), jnp.float32),  # halo'd avg row
        pltpu.VMEM((tile_b, tile_l + 2 * PADDING), jnp.float32),  # halo'd max row
    ]
    w_spec = pl.BlockSpec(memory_space=pltpu.MemorySpace.SMEM)    # 2x7 conv weights as scalars

    if nl == 1:
        kernel = _make_single_tile_kernel(C, tile_b, tile_l, c_chunk)
        grid = (nb,)
        x_spec = pl.BlockSpec((tile_b, C, tile_l), lambda i: (i, 0, 0))
        o_spec = pl.BlockSpec((tile_b, 1, tile_l), lambda i: (i, 0, 0))
        dims = ("parallel",)
    else:
        kernel = _make_multi_tile_kernel(C, tile_b, tile_l, nl, c_chunk)
        grid = (nb, nl + 1)  # one trailing step per B tile flushes the last L tile
        # Clamp the trailing step to the last tile (same index as the previous step
        # -> the pipeline does not need fresh data there).
        x_spec = pl.BlockSpec((tile_b, C, tile_l),
                              lambda i, j: (i, 0, jnp.minimum(j, nl - 1)))
        # Output for tile t is emitted at step t+1 (revisited index at j=0/1 is fine:
        # writeback happens after the j=1 write).
        o_spec = pl.BlockSpec((tile_b, 1, tile_l),
                              lambda i, j: (i, 0, jnp.maximum(j - 1, 0)))
        dims = ("parallel", "arbitrary")

    return pl.pallas_call(
        kernel,
        out_shape=out_shape,
        grid=grid,
        in_specs=[w_spec, x_spec],
        out_specs=o_spec,
        scratch_shapes=scratch_shapes,
        compiler_params=pltpu.CompilerParams(
            dimension_semantics=dims,
            vmem_limit_bytes=vmem_limit_bytes),
    )(w2, x)


# ------------------------------- reference -------------------------------------

def spatial_attention_ref(x, conv_weight):
    """Pure-JAX reference mirroring the PyTorch forward (computed in f32)."""
    xf = x.astype(jnp.float32)
    avg = jnp.mean(xf, axis=1, keepdims=True)      # (B, 1, L)
    mx = jnp.max(xf, axis=1, keepdims=True)        # (B, 1, L)
    y = jnp.concatenate([avg, mx], axis=1)         # (B, 2, L)
    out = jax.lax.conv_general_dilated(
        y, conv_weight.astype(jnp.float32), window_strides=(1,),
        padding=[(PADDING, PADDING)], dimension_numbers=("NCH", "OIH", "NCH"))
    return jax.nn.sigmoid(out)


# --------------------------------- demo -----------------------------------------

if __name__ == "__main__":
    key = jax.random.PRNGKey(0)
    kx, kw, kx2, kx3 = jax.random.split(key, 4)

    # Deterministic Conv1d(2, 1, 7, bias=False) weight, shape (out=1, in=2, K=7)
    fan_in = 2 * KERNEL_SIZE
    bound = 1.0 / (fan_in ** 0.5)
    conv_weight = jax.random.uniform(
        kw, (1, 2, KERNEL_SIZE), dtype=jnp.float32, minval=-bound, maxval=bound)

    # Primary small example consistent with the module: (B, C, L) = (2, 4, 16)
    B, C, L = 2, 4, 16
    x = jax.random.normal(kx, (B, C, L), dtype=jnp.float32)
    out = jax.block_until_ready(spatial_attention(x, conv_weight))
    ref = spatial_attention_ref(x, conv_weight)
    assert out.shape == (B, 1, L)
    assert jnp.allclose(out, ref, atol=1e-5, rtol=1e-5), "mismatch (single-tile path)"

    # Exercise the (B, L)-tiled multi-tile path with lane-dense 128-wide L tiles.
    x2 = jax.random.normal(kx2, (4, 16, 512), dtype=jnp.float32)
    out2 = jax.block_until_ready(spatial_attention(x2, conv_weight, tile_b=2, tile_l=128))
    ref2 = spatial_attention_ref(x2, conv_weight)
    assert out2.shape == (4, 1, 512)
    assert jnp.allclose(out2, ref2, atol=1e-5, rtol=1e-5), "mismatch (multi-tile path)"

    # Native-dtype DMA: bf16 streamed straight from HBM, cast to f32 inside the kernel.
    x3 = jax.random.normal(kx3, (2, 16, 256), dtype=jnp.float32).astype(jnp.bfloat16)
    out3 = jax.block_until_ready(spatial_attention(x3, conv_weight))
    ref3 = spatial_attention_ref(x3, conv_weight)
    assert out3.dtype == jnp.bfloat16
    assert jnp.allclose(out3.astype(jnp.float32), ref3, atol=2e-2, rtol=2e-2), \
        "mismatch (bf16 path)"

    print("KERNEL_OK")
</pallas_src>

<mosaic_0001>
module attributes {stable_mosaic.version = 11 : i64} {
  func.func @kernel(%arg0: i32, %arg1: memref<2x7xf32, #tpu.memory_space<smem>>, %arg2: memref<2x4x16xf32, #tpu.memory_space<vmem>>, %arg3: memref<2x1x16xf32, #tpu.memory_space<vmem>>, %arg4: memref<2x22xf32, #tpu.memory_space<vmem>>, %arg5: memref<2x22xf32, #tpu.memory_space<vmem>>) attributes {dimension_semantics = [#tpu.dimension_semantics<parallel>], iteration_bounds = array<i64: 1>, scalar_prefetch = 0 : i64, scratch_operands = 2 : i64, tpu.core_type = #tpu.core_type<tc>, window_params = [{transform_indices = @transform_0, window_bounds = array<i64: 2, 7>}, {transform_indices = @transform_1, window_bounds = array<i64: 2, 4, 16>}, {transform_indices = @transform_2, window_bounds = array<i64: 2, 1, 16>}]} {
    %cst = arith.constant 0.000000e+00 : f32
    %0 = vector.broadcast %cst : f32 to vector<2x16xf32>
    %cst_0 = arith.constant 0xFF800000 : f32
    %1 = vector.broadcast %cst_0 : f32 to vector<2x16xf32>
    %c0 = arith.constant 0 : index
    %c0_1 = arith.constant 0 : index
    %c0_2 = arith.constant 0 : index
    %2 = vector.load %arg2[%c0, %c0_1, %c0_2] : memref<2x4x16xf32, #tpu.memory_space<vmem>>, vector<2x4x16xf32>
    %cst_3 = arith.constant dense<0.000000e+00> : vector<2x16xf32>
    %3 = vector.multi_reduction <add>, %2, %cst_3 [1] : vector<2x4x16xf32> to vector<2x16xf32>
    %4 = arith.addf %0, %3 : vector<2x16xf32>
    %cst_4 = arith.constant dense<0xFF800000> : vector<2x16xf32>
    %5 = vector.multi_reduction <maximumf>, %2, %cst_4 [1] : vector<2x4x16xf32> to vector<2x16xf32>
    %6 = arith.maximumf %1, %5 : vector<2x16xf32>
    %cst_5 = arith.constant 2.500000e-01 : f32
    %7 = vector.broadcast %cst_5 : f32 to vector<2x16xf32>
    %8 = arith.mulf %4, %7 : vector<2x16xf32>
    %cst_6 = arith.constant 0.000000e+00 : f32
    %9 = vector.broadcast %cst_6 : f32 to vector<2x3xf32>
    %c0_7 = arith.constant 0 : index
    %c0_8 = arith.constant 0 : index
    %10 = vector.load %arg4[%c0_7, %c0_8] : memref<2x22xf32, #tpu.memory_space<vmem>>, vector<2x3xf32>
    tpu.vector_store %arg4[%c0_7, %c0_8], %9 {strides = array<i32>} : memref<2x22xf32, #tpu.memory_space<vmem>>, vector<2x3xf32>,
    %c0_9 = arith.constant 0 : index
    %c19 = arith.constant 19 : index
    %11 = vector.load %arg4[%c0_9, %c19] : memref<2x22xf32, #tpu.memory_space<vmem>>, vector<2x3xf32>
    tpu.vector_store %arg4[%c0_9, %c19], %9 {strides = array<i32>} : memref<2x22xf32, #tpu.memory_space<vmem>>, vector<2x3xf32>,
    %c0_10 = arith.constant 0 : index
    %c3 = arith.constant 3 : index
    %12 = vector.load %arg4[%c0_10, %c3] : memref<2x22xf32, #tpu.memory_space<vmem>>, vector<2x16xf32>
    tpu.vector_store %arg4[%c0_10, %c3], %8 {strides = array<i32>} : memref<2x22xf32, #tpu.memory_space<vmem>>, vector<2x16xf32>,
    %c0_11 = arith.constant 0 : index
    %c0_12 = arith.constant 0 : index
    %13 = vector.load %arg5[%c0_11, %c0_12] : memref<2x22xf32, #tpu.memory_space<vmem>>, vector<2x3xf32>
    tpu.vector_store %arg5[%c0_11, %c0_12], %9 {strides = array<i32>} : memref<2x22xf32, #tpu.memory_space<vmem>>, vector<2x3xf32>,
    %c0_13 = arith.constant 0 : index
    %c19_14 = arith.constant 19 : index
    %14 = vector.load %arg5[%c0_13, %c19_14] : memref<2x22xf32, #tpu.memory_space<vmem>>, vector<2x3xf32>
    tpu.vector_store %arg5[%c0_13, %c19_14], %9 {strides = array<i32>} : memref<2x22xf32, #tpu.memory_space<vmem>>, vector<2x3xf32>,
    %c0_15 = arith.constant 0 : index
    %c3_16 = arith.constant 3 : index
    %15 = vector.load %arg5[%c0_15, %c3_16] : memref<2x22xf32, #tpu.memory_space<vmem>>, vector<2x16xf32>
    tpu.vector_store %arg5[%c0_15, %c3_16], %6 {strides = array<i32>} : memref<2x22xf32, #tpu.memory_space<vmem>>, vector<2x16xf32>,
    %c0_17 = arith.constant 0 : index
    %c0_18 = arith.constant 0 : index
    %16 = vector.load %arg4[%c0_17, %c0_18] : memref<2x22xf32, #tpu.memory_space<vmem>>, vector<2x22xf32>
    %c0_19 = arith.constant 0 : index
    %c0_20 = arith.constant 0 : index
    %17 = vector.load %arg5[%c0_19, %c0_20] : memref<2x22xf32, #tpu.memory_space<vmem>>, vector<2x22xf32>
    %cst_21 = arith.constant 0.000000e+00 : f32
    %18 = vector.broadcast %cst_21 : f32 to vector<2x16xf32>
    %c0_22 = arith.constant 0 : index
    %c0_23 = arith.constant 0 : index
    %19 = memref.load %arg1[%c0_22, %c0_23] : memref<2x7xf32, #tpu.memory_space<smem>>
    %20 = vector.extract_strided_slice %16 {offsets = [0, 0], sizes = [2, 16], strides = [1, 1]} : vector<2x22xf32> to vector<2x16xf32>
    %21 = vector.broadcast %19 : f32 to vector<2x16xf32>
    %22 = arith.mulf %21, %20 : vector<2x16xf32>
    %23 = arith.addf %18, %22 : vector<2x16xf32>
    %c1 = arith.constant 1 : index
    %c0_24 = arith.constant 0 : index
    %24 = memref.load %arg1[%c1, %c0_24] : memref<2x7xf32, #tpu.memory_space<smem>>
    %25 = vector.extract_strided_slice %17 {offsets = [0, 0], sizes = [2, 16], strides = [1, 1]} : vector<2x22xf32> to vector<2x16xf32>
    %26 = vector.broadcast %24 : f32 to vector<2x16xf32>
    %27 = arith.mulf %26, %25 : vector<2x16xf32>
    %28 = arith.addf %23, %27 : vector<2x16xf32>
    %c0_25 = arith.constant 0 : index
    %c1_26 = arith.constant 1 : index
    %29 = memref.load %arg1[%c0_25, %c1_26] : memref<2x7xf32, #tpu.memory_space<smem>>
    %30 = vector.extract_strided_slice %16 {offsets = [0, 1], sizes = [2, 16], strides = [1, 1]} : vector<2x22xf32> to vector<2x16xf32>
    %31 = vector.broadcast %29 : f32 to vector<2x16xf32>
    %32 = arith.mulf %31, %30 : vector<2x16xf32>
    %33 = arith.addf %28, %32 : vector<2x16xf32>
    %c1_27 = arith.constant 1 : index
    %c1_28 = arith.constant 1 : index
    %34 = memref.load %arg1[%c1_27, %c1_28] : memref<2x7xf32, #tpu.memory_space<smem>>
    %35 = vector.extract_strided_slice %17 {offsets = [0, 1], sizes = [2, 16], strides = [1, 1]} : vector<2x22xf32> to vector<2x16xf32>
    %36 = vector.broadcast %34 : f32 to vector<2x16xf32>
    %37 = arith.mulf %36, %35 : vector<2x16xf32>
    %38 = arith.addf %33, %37 : vector<2x16xf32>
    %c0_29 = arith.constant 0 : index
    %c2 = arith.constant 2 : index
    %39 = memref.load %arg1[%c0_29, %c2] : memref<2x7xf32, #tpu.memory_space<smem>>
    %40 = vector.extract_strided_slice %16 {offsets = [0, 2], sizes = [2, 16], strides = [1, 1]} : vector<2x22xf32> to vector<2x16xf32>
    %41 = vector.broadcast %39 : f32 to vector<2x16xf32>
    %42 = arith.mulf %41, %40 : vector<2x16xf32>
    %43 = arith.addf %38, %42 : vector<2x16xf32>
    %c1_30 = arith.constant 1 : index
    %c2_31 = arith.constant 2 : index
    %44 = memref.load %arg1[%c1_30, %c2_31] : memref<2x7xf32, #tpu.memory_space<smem>>
    %45 = vector.extract_strided_slice %17 {offsets = [0, 2], sizes = [2, 16], strides = [1, 1]} : vector<2x22xf32> to vector<2x16xf32>
    %46 = vector.broadcast %44 : f32 to vector<2x16xf32>
    %47 = arith.mulf %46, %45 : vector<2x16xf32>
    %48 = arith.addf %43, %47 : vector<2x16xf32>
    %c0_32 = arith.constant 0 : index
    %c3_33 = arith.constant 3 : index
    %49 = memref.load %arg1[%c0_32, %c3_33] : memref<2x7xf32, #tpu.memory_space<smem>>
    %50 = vector.extract_strided_slice %16 {offsets = [0, 3], sizes = [2, 16], strides = [1, 1]} : vector<2x22xf32> to vector<2x16xf32>
    %51 = vector.broadcast %49 : f32 to vector<2x16xf32>
    %52 = arith.mulf %51, %50 : vector<2x16xf32>
    %53 = arith.addf %48, %52 : vector<2x16xf32>
    %c1_34 = arith.constant 1 : index
    %c3_35 = arith.constant 3 : index
    %54 = memref.load %arg1[%c1_34, %c3_35] : memref<2x7xf32, #tpu.memory_space<smem>>
    %55 = vector.extract_strided_slice %17 {offsets = [0, 3], sizes = [2, 16], strides = [1, 1]} : vector<2x22xf32> to vector<2x16xf32>
    %56 = vector.broadcast %54 : f32 to vector<2x16xf32>
    %57 = arith.mulf %56, %55 : vector<2x16xf32>
    %58 = arith.addf %53, %57 : vector<2x16xf32>
    %c0_36 = arith.constant 0 : index
    %c4 = arith.constant 4 : index
    %59 = memref.load %arg1[%c0_36, %c4] : memref<2x7xf32, #tpu.memory_space<smem>>
    %60 = vector.extract_strided_slice %16 {offsets = [0, 4], sizes = [2, 16], strides = [1, 1]} : vector<2x22xf32> to vector<2x16xf32>
    %61 = vector.broadcast %59 : f32 to vector<2x16xf32>
    %62 = arith.mulf %61, %60 : vector<2x16xf32>
    %63 = arith.addf %58, %62 : vector<2x16xf32>
    %c1_37 = arith.constant 1 : index
    %c4_38 = arith.constant 4 : index
    %64 = memref.load %arg1[%c1_37, %c4_38] : memref<2x7xf32, #tpu.memory_space<smem>>
    %65 = vector.extract_strided_slice %17 {offsets = [0, 4], sizes = [2, 16], strides = [1, 1]} : vector<2x22xf32> to vector<2x16xf32>
    %66 = vector.broadcast %64 : f32 to vector<2x16xf32>
    %67 = arith.mulf %66, %65 : vector<2x16xf32>
    %68 = arith.addf %63, %67 : vector<2x16xf32>
    %c0_39 = arith.constant 0 : index
    %c5 = arith.constant 5 : index
    %69 = memref.load %arg1[%c0_39, %c5] : memref<2x7xf32, #tpu.memory_space<smem>>
    %70 = vector.extract_strided_slice %16 {offsets = [0, 5], sizes = [2, 16], strides = [1, 1]} : vector<2x22xf32> to vector<2x16xf32>
    %71 = vector.broadcast %69 : f32 to vector<2x16xf32>
    %72 = arith.mulf %71, %70 : vector<2x16xf32>
    %73 = arith.addf %68, %72 : vector<2x16xf32>
    %c1_40 = arith.constant 1 : index
    %c5_41 = arith.constant 5 : index
    %74 = memref.load %arg1[%c1_40, %c5_41] : memref<2x7xf32, #tpu.memory_space<smem>>
    %75 = vector.extract_strided_slice %17 {offsets = [0, 5], sizes = [2, 16], strides = [1, 1]} : vector<2x22xf32> to vector<2x16xf32>
    %76 = vector.broadcast %74 : f32 to vector<2x16xf32>
    %77 = arith.mulf %76, %75 : vector<2x16xf32>
    %78 = arith.addf %73, %77 : vector<2x16xf32>
    %c0_42 = arith.constant 0 : index
    %c6 = arith.constant 6 : index
    %79 = memref.load %arg1[%c0_42, %c6] : memref<2x7xf32, #tpu.memory_space<smem>>
    %80 = vector.extract_strided_slice %16 {offsets = [0, 6], sizes = [2, 16], strides = [1, 1]} : vector<2x22xf32> to vector<2x16xf32>
    %81 = vector.broadcast %79 : f32 to vector<2x16xf32>
    %82 = arith.mulf %81, %80 : vector<2x16xf32>
    %83 = arith.addf %78, %82 : vector<2x16xf32>
    %c1_43 = arith.constant 1 : index
    %c6_44 = arith.constant 6 : index
    %84 = memref.load %arg1[%c1_43, %c6_44] : memref<2x7xf32, #tpu.memory_space<smem>>
    %85 = vector.extract_strided_slice %17 {offsets = [0, 6], sizes = [2, 16], strides = [1, 1]} : vector<2x22xf32> to vector<2x16xf32>
    %86 = vector.broadcast %84 : f32 to vector<2x16xf32>
    %87 = arith.mulf %86, %85 : vector<2x16xf32>
    %88 = arith.addf %83, %87 : vector<2x16xf32>
    %89 = arith.negf %88 : vector<2x16xf32>
    %90 = math.exp %89 : vector<2x16xf32>
    %cst_45 = arith.constant 1.000000e+00 : f32
    %91 = vector.broadcast %cst_45 : f32 to vector<2x16xf32>
    %92 = arith.addf %91, %90 : vector<2x16xf32>
    %93 = arith.divf %91, %92 : vector<2x16xf32>
    %94 = vector.shape_cast %93 : vector<2x16xf32> to vector<2x1x16xf32>
    %c0_46 = arith.constant 0 : index
    %c0_47 = arith.constant 0 : index
    %c0_48 = arith.constant 0 : index
    %95 = vector.load %arg3[%c0_46, %c0_47, %c0_48] : memref<2x1x16xf32, #tpu.memory_space<vmem>>, vector<2x1x16xf32>
    tpu.vector_store %arg3[%c0_46, %c0_47, %c0_48], %94 {strides = array<i32>} : memref<2x1x16xf32, #tpu.memory_space<vmem>>, vector<2x1x16xf32>,
    return
  }
  func.func @transform_0(%arg0: i32) -> (i32, i32) {
    %c0_i32 = arith.constant 0 : i32
    %c0_i32_0 = arith.constant 0 : i32
    %c0_i32_1 = arith.constant 0 : i32
    return %c0_i32, %c0_i32_0 : i32, i32
  }
  func.func @transform_1(%arg0: i32) -> (i32, i32, i32) {
    %c0_i32 = arith.constant 0 : i32
    %c0_i32_0 = arith.constant 0 : i32
    %c0_i32_1 = arith.constant 0 : i32
    return %arg0, %c0_i32, %c0_i32_0 : i32, i32, i32
  }
  func.func @transform_2(%arg0: i32) -> (i32, i32, i32) {
    %c0_i32 = arith.constant 0 : i32
    %c0_i32_0 = arith.constant 0 : i32
    %c0_i32_1 = arith.constant 0 : i32
    return %arg0, %c0_i32, %c0_i32_0 : i32, i32, i32
  }
}

</mosaic_0001>

<bundles_post_ra>
// kernel: tpu_custom_call.1
= control target key start
LH: loop header
LB: loop body
LE: loop exit
PB: predicated region body
PF: predicated region fallthrough
CT: control target
= control target key end

     0   :  { %7 = vsyncpa [#allocation7], 0  ;;  %s413_s0 = inlined_call_operand.hbm [shape: f32[2,7], index: 0, kind: input, shape index: {}]   ;;  %s414_s1 = inlined_call_operand.hbm [shape: f32[2,4,16], index: 1, kind: input, shape index: {}]   ;;  %s415_s2 = inlined_call_operand.hbm [shape: f32[2,1,16], index: 2, kind: output, shape index: {}]  }
   0x1   :  { %8 = vsyncpa [#allocation5], 0 }
   0x2   :  { %9 = vsyncpa [#allocation6], 0  ;;  %s286_s11 = scalar_lea.hbm %s413_s0, 32 }
   0x3   :  { %p287_p0 = scmp.ne.s32.totalorder %s413_s0, %s286_s11  ;;  %p290_p1 = scmp.lt.u32.totalorder %s286_s11, %s413_s0 }
   0x5   :  { %p292_p2 = pnand %p290_p1, %p287_p0 }
   0x7   :  { %295 = shalt.err (!%p292_p2)
}
   0x8   :  { %s346_s16 = smov [#allocation4]   ;;  %s347_s19 = smov [#allocation8]  }
   0x9   :  { %17 = dma.hbm_to_smem %s413_s0, 32, %s346_s16, [#allocation7]  }
   0xa   :  { %s23_s20 = sshll.u32 %s347_s19, 4  ;;  %s296_s23 = scalar_lea.hbm %s414_s1, 128  ;;  %s24_s20 = int_to_ptr.vmem [resolvable:$true] %s23_s20 }
   0xb   :  { %p297_p3 = scmp.ne.s32.totalorder %s414_s1, %s296_s23  ;;  %p300_p4 = scmp.lt.u32.totalorder %s296_s23, %s414_s1 }
   0xd   :  { %p302_p5 = pnand %p300_p4, %p297_p3 }
   0xf   :  { %305 = shalt.err (!%p302_p5)
}
  0x10   :  { %s306_s28 = scalar_lea.vmem %s24_s20, 128  ;;  %p311_p7 = scmp.lt.s32.totalorder %s24_s20, %s24_s20 }
  0x11   :  { %p307_p6 = scmp.ne.s32.totalorder %s24_s20, %s306_s28  ;;  %p312_p8 = scmp.lt.s32.totalorder %s306_s28, %s306_s28 }
  0x13   :  { %p313_p9 = por %p312_p8, %p311_p7 }
  0x15   :  { %p314_p10 = pnand %p313_p9, %p307_p6 }
  0x17   :  { %317 = shalt.err (!%p314_p10)
}
  0x18   :  { %s348_s0 = smov 64   ;;  %s349_s29 = smov 4  }
  0x19   :  { %29 = dma.hbm_to_vmem [thread:$0]  %s414_s1, 128, %s24_s20, [#allocation5], %s348_s0, %s348_s0, %s349_s29  }
  0x1a   :  { %340 = dma.done.wait [#allocation7], 32  }
  0x1b   :  { %341 = vsyncadd [#allocation7], 4294967264 }
  0x1c   :  { %342 = dma.done.wait [#allocation5], 128  }
  0x1d   :  { %343 = vsyncadd [#allocation5], 4294967168 }
  0x1e   :  { %36 = sfence }
  0x1f   :  { %v37_v0 = vld [vmem:[#allocation8] sm:$0xf]  ;;  %v38_v1 = vld [vmem:[#allocation8 + $0x4] sm:$0xf]  ;;  %vm39_vm0 = vcmask 125952   ;;  %vm72_vm1 = vcmask 17408  }
  0x20   :  { %v40_v2 = vsel %vm39_vm0, %v37_v0, 0.0  ;;  %v47_v3 = vsel %vm39_vm0, %v38_v1, 0.0  ;;  %v56_v4 = vsel %vm39_vm0, %v37_v0, -inf  ;;  %v63_v5 = vsel %vm39_vm0, %v38_v1, -inf  ;;  %s351_s1 = smov 3   ;;  %s255_s4 = sld [smem:[#allocation4 + $0x2]] }
  0x21   :  { %v41_v6 = vrot.slane %v40_v2, 4  ;;  %v48_v7 = vrot.slane %v47_v3, 4  ;;  %v57_v8 = vrot.slane %v56_v4, 4  ;;  %v64_v9 = vrot.slane %v63_v5, 4  ;;  %s253_s5 = sld [smem:[#allocation4 + $0x1]]  ;;  %s257_s6 = sld [smem:[#allocation4 + $0x3]] }
  0x22   :  { %vm74_vm2 = vcmask 173208   ;;  %v350_v14 = vmov 0.0   ;;  %vm78_vm3 = vcmask 1041409   ;;  %vm83_vm4 = vcmask 148504   ;;  %s254_s7 = sld [smem:[#allocation4 + $0x81]]  ;;  %s96_s8 = sld [smem:[#allocation4]] }
  0x23   :  { %v42_v10 = vadd.f32 %v41_v6, %v40_v2  ;;  %v49_v11 = vadd.f32 %v48_v7, %v47_v3  ;;  %v58_v12 = vmax.f32 %v56_v4, %v57_v8  ;;  %v65_v13 = vmax.f32 %v63_v5, %v64_v9  ;;  %73 = vst.msk [vmem:[#allocation2] sm:$0x3] %vm72_vm1, %v350_v14  ;;  %s252_s9 = sld [smem:[#allocation4 + $0x80]]  ;;  %s259_s10 = sld [smem:[#allocation4 + $0x4]] }
  0x24   :  { %85 = vst.msk [vmem:[#allocation3] sm:$0x3] %vm72_vm1, %v350_v14  ;;  %s256_s11 = sld [smem:[#allocation4 + $0x82]]  ;;  %s261_s12 = sld [smem:[#allocation4 + $0x5]]  ;;  %vm231_vm5 = vcmask 122880  }
  0x25   :  { %75 = vst.msk [vmem:[#allocation2] sm:$0x3] %vm74_vm2, %v350_v14  ;;  %86 = vst.msk [vmem:[#allocation3] sm:$0x3] %vm74_vm2, %v350_v14  ;;  %v43_v15 = vrot.slane %v42_v10, 2  ;;  %v50_v16 = vrot.slane %v49_v11, 2 }
  0x26   :  { %v59_v17 = vrot.slane %v58_v12, 2  ;;  %v66_v18 = vrot.slane %v65_v13, 2  ;;  %v121_v37 = vstv %s255_s4  ;;  %s258_s13 = sld [smem:[#allocation4 + $0x83]]  ;;  %s352_s14 = smov 126  }
  0x27   :  { %v44_v19 = vadd.f32 %v43_v15, %v42_v10  ;;  %v51_v20 = vadd.f32 %v50_v16, %v49_v11  ;;  %v105_v38 = vstv %s253_s5  ;;  %v137_v42 = vstv %s257_s6  ;;  %s353_s15 = smov 127   ;;  %s263_s16 = sld [smem:[#allocation4 + $0x6]] }
  0x28   :  { %v60_v21 = vmax.f32 %v58_v12, %v59_v17  ;;  %v67_v22 = vmax.f32 %v65_v13, %v66_v18  ;;  %v113_v43 = vstv %s254_s7  ;;  %v97_v44 = vstv %s96_s8  ;;  %s260_s17 = sld [smem:[#allocation4 + $0x84]]  ;;  %s354_s18 = smov 125  }
  0x29   :  { %v45_v23 = vrot.slane %v44_v19, 1  ;;  %v52_v24 = vrot.slane %v51_v20, 1  ;;  %v101_v45 = vstv %s252_s9  ;;  %v153_v49 = vstv %s259_s10  ;;  %s262_s19 = sld [smem:[#allocation4 + $0x85]]  ;;  %s355_s20 = smov 124  }
  0x2a   :  { %v61_v25 = vrot.slane %v60_v21, 1  ;;  %v68_v26 = vrot.slane %v67_v22, 1  ;;  %v129_v50 = vstv %s256_s11  ;;  %v169_v56 = vstv %s261_s12  ;;  %s264_s21 = sld [smem:[#allocation4 + $0x86]]  ;;  %s356_s22 = smov 123  }
  0x2b   :  { %v46_v27 = vadd.f32 %v45_v23, %v44_v19  ;;  %v53_v28 = vadd.f32 %v52_v24, %v51_v20  ;;  %s357_s23 = smov 122   ;;  %s359_s24 = smov [#allocation9]  }
  0x2c   :  { %v62_v31 = vmax.f32 %v60_v21, %v61_v25  ;;  %v69_v32 = vmax.f32 %v67_v22, %v68_v26  ;;  %v145_v57 = vstv %s258_s13  ;;  %s239_s25 = sshll.u32 %s359_s24, 4  ;;  %s240_s25 = int_to_ptr.vmem [resolvable:$true] %s239_s25 }
  0x2d   :  { %v70_v29 = vmul.f32 0.25, %v46_v27  ;;  %v71_v30 = vmul.f32 0.25, %v53_v28  ;;  %v185_v60 = vstv %s263_s16  ;;  %s318_s26 = scalar_lea.vmem %s240_s25, 32  ;;  %p323_p12 = scmp.lt.s32.totalorder %s240_s25, %s240_s25 }
  0x2e   :  { %v89_v34 = vsel %vm78_vm3, %v69_v32, %v62_v31  ;;  %v161_v61 = vstv %s260_s17  ;;  %v358_v31 = vmov 1966171168   ;;  %p319_p11 = scmp.ne.s32.totalorder %s240_s25, %s318_s26  ;;  %p324_p13 = scmp.lt.s32.totalorder %s318_s26, %s318_s26 }
  0x2f   :  { %v79_v33 = vsel %vm78_vm3, %v71_v30, %v70_v29  ;;  %v177_v0 = vstv %s262_s19  ;;  %v208_v32 = vunpack.c.l.s4 %v358_v31 }
  0x30   :  { %80 = vrot.lane.b32.xlu0 %v79_v33, %s351_s1  ;;  %v193_v2 = vstv %s264_s21  ;;  %v210_v33 = vlaneseq  ;;  %p325_p0 = por %p324_p13, %p323_p12 }
  0x32   :  { %p326_p1 = pnand %p325_p0, %p319_p11 }
  0x34   :  { %90 = vrot.lane.b32.xlu0 %v89_v34, %s351_s1  ;;  %v209_v34 = vunpack.c.0.s8 %v208_v32 }
  0xa2   :  { %v81_v35 = vpop.permute.xlu0 %80 }
  0xa3   :  { %84 = vst.msk [vmem:[#allocation2] sm:$0x3] %vm83_vm4, %v81_v35  ;;  %v211_v35 = vshrl.u32 %v210_v33, 7 }
  0xa6   :  { %v91_v36 = vpop.permute.xlu0 %90 }
  0xa7   :  { %93 = vst.msk [vmem:[#allocation3] sm:$0x3] %vm83_vm4, %v91_v36  ;;  %v212_v36 = vsub.s32 %v209_v34, %v211_v35 }
  0xaa   :  { %v94_v39 = vld [vmem:[#allocation2] sm:$0x3] }
  0xab   :  { %v122_v40 = vmul.f32 %v121_v37, %v94_v39  ;;  %v106_v41 = vmul.f32 %v105_v38, %v94_v39  ;;  %v138_v47 = vmul.f32 %v137_v42, %v94_v39  ;;  %v98_v51 = vmul.f32 %v97_v44, %v94_v39 }
  0xac   :  { %v154_v54 = vmul.f32 %v153_v49, %v94_v39  ;;  %v170_v58 = vmul.f32 %v169_v56, %v94_v39  ;;  %v186_v62 = vmul.f32 %v185_v60, %v94_v39 }
  0xad   :  { %124 = vrot.lane.b32.xlu0 %v122_v40, %s352_s14  ;;  %108 = vrot.lane.b32.xlu1 %v106_v41, %s353_s15 }
  0xae   :  { %v95_v46 = vld [vmem:[#allocation3] sm:$0x3] }
  0xaf   :  { %v114_v48 = vmul.f32 %v113_v43, %v95_v46  ;;  %v102_v52 = vmul.f32 %v101_v45, %v95_v46  ;;  %v130_v55 = vmul.f32 %v129_v50, %v95_v46  ;;  %v146_v59 = vmul.f32 %v145_v57, %v95_v46 }
  0xb0   :  { %v162_v63 = vmul.f32 %v161_v61, %v95_v46  ;;  %v178_v1 = vmul.f32 %v177_v0, %v95_v46  ;;  %v194_v3 = vmul.f32 %v193_v2, %v95_v46 }
  0xb1   :  { %140 = vrot.lane.b32.xlu0 %v138_v47, %s354_s18  ;;  %116 = vrot.lane.b32.xlu1 %v114_v48, %s353_s15  ;;  %v103_v53 = vadd.f32 %v102_v52, %v98_v51 }
  0xb5   :  { %156 = vrot.lane.b32.xlu0 %v154_v54, %s355_s20  ;;  %132 = vrot.lane.b32.xlu1 %v130_v55, %s352_s14 }
  0xb9   :  { %172 = vrot.lane.b32.xlu0 %v170_v58, %s356_s22  ;;  %148 = vrot.lane.b32.xlu1 %v146_v59, %s354_s18 }
  0xbd   :  { %188 = vrot.lane.b32.xlu0 %v186_v62, %s357_s23  ;;  %164 = vrot.lane.b32.xlu1 %v162_v63, %s355_s20 }
  0xc1   :  { %180 = vrot.lane.b32.xlu1 %v178_v1, %s356_s22 }
  0xc5   :  { %196 = vrot.lane.b32.xlu1 %v194_v3, %s357_s23 }
 0x11f   :  { %v109_v4 = vpop.permute.xlu1 %108  ;;  %v125_v5 = vpop.permute.xlu0 %124 }
 0x120   :  { %v111_v6 = vadd.f32 %v109_v4, %v103_v53 }
 0x123   :  { %v117_v7 = vpop.permute.xlu1 %116  ;;  %v141_v8 = vpop.permute.xlu0 %140 }
 0x124   :  { %v119_v9 = vadd.f32 %v117_v7, %v111_v6 }
 0x126   :  { %v127_v10 = vadd.f32 %v125_v5, %v119_v9 }
 0x127   :  { %v133_v11 = vpop.permute.xlu1 %132  ;;  %v157_v13 = vpop.permute.xlu0 %156 }
 0x128   :  { %v135_v12 = vadd.f32 %v133_v11, %v127_v10 }
 0x12a   :  { %v143_v14 = vadd.f32 %v141_v8, %v135_v12 }
 0x12b   :  { %v149_v15 = vpop.permute.xlu1 %148  ;;  %v173_v18 = vpop.permute.xlu0 %172 }
 0x12c   :  { %v151_v16 = vadd.f32 %v149_v15, %v143_v14 }
 0x12e   :  { %v159_v17 = vadd.f32 %v157_v13, %v151_v16 }
 0x12f   :  { %v165_v19 = vpop.permute.xlu1 %164  ;;  %v189_v24 = vpop.permute.xlu0 %188 }
 0x130   :  { %v167_v20 = vadd.f32 %v165_v19, %v159_v17 }
 0x132   :  { %v175_v21 = vadd.f32 %v173_v18, %v167_v20 }
 0x133   :  { %v181_v22 = vpop.permute.xlu1 %180 }
 0x134   :  { %v183_v23 = vadd.f32 %v181_v22, %v175_v21 }
 0x136   :  { %v191_v25 = vadd.f32 %v189_v24, %v183_v23 }
 0x137   :  { %v197_v26 = vpop.permute.xlu1 %196 }
 0x138   :  { %v199_v27 = vadd.f32 %v197_v26, %v191_v25 }
 0x13a   :  { %v265_v28 = vmul.f32 -1.442695, %v199_v27 }
 0x13c   :  { %282 = vpow2.f32 %v265_v28 }
 0x146   :  { %v283_v29 = vpop.eup %282 }
 0x147   :  { %v203_v30 = vadd.f32 1.0, %v283_v29 }
 0x149   :  { %284 = vrcp.f32 %v203_v30 }
 0x153   :  { %v285_v37 = vpop.eup %284 }
 0x154   :  { %v213_v38 = vrot.slane %v285_v37, %v212_v36 }
 0x156   :  { %v214_v39 = vcombine.high %v213_v38, %v213_v38  ;;  %v221_v40 = vrot.slane %v213_v38, %v212_v36 }
 0x158   :  { %v228_v41 = vrot.slane %v214_v39, %v212_v36  ;;  %232 = vst.msk [vmem:[#allocation9] sm:$0x1] %vm231_vm5, %v221_v40 }
 0x15a   :  { %233 = vst.msk [vmem:[#allocation9 + $0x1] sm:$0x1] %vm231_vm5, %v228_v41 }
 0x15b   :  { %329 = shalt.err (!%p326_p1)
}
 0x15c   :  { %s330_s0 = scalar_lea.hbm %s415_s2, 32 }
 0x15d   :  { %p331_p2 = scmp.ne.s32.totalorder %s415_s2, %s330_s0  ;;  %p334_p3 = scmp.lt.u32.totalorder %s330_s0, %s415_s2 }
 0x15f   :  { %p336_p4 = pnand %p334_p3, %p331_p2 }
 0x161   :  { %339 = shalt.err (!%p336_p4)
}
 0x162   :  { %s360_s4 = smov 16   ;;  %s361_s5 = smov 1  }
 0x163   :  { %245 = dma.vmem_to_hbm [thread:$0]  %s240_s25, 32, %s415_s2, [#allocation6], %s360_s4, %s360_s4, %s361_s5  }
 0x164   :  { %344 = dma.done.wait [#allocation6], 32  }
 0x165   :  { %345 = vsyncadd [#allocation6], 4294967264 }
 0x166   :  { %249 = vsyncpa [#allocation5], 1 }
 0x167   :  { %250 = vsyncpa [#allocation6], 1 }
 0x168   :  { %251 = vsyncpa [#allocation7], 1 }

</bundles_post_ra>
